<compile_context>
chip_gen: v5e
topology: v5e:2x2
jax: 0.10.0
libtpu: 0.0.40
codegen_flags: <defaults>
</compile_context>

<pallas_src>
import numpy as np
import jax
import jax.numpy as jnp
from jax.experimental import pallas as pl
from jax.experimental.pallas import tpu as pltpu

_LANE = 128
_SUBLANE = 8


def _round_up(n, m):
    return ((n + m - 1) // m) * m


def _decoder_kernel(y_ref, w1_ref, b1_ref, w2_ref, b2_ref, w3_ref, b3_ref,
                    w4_ref, b4_ref, wpass_ref, o_ref):
    y = y_ref[...]
    # hidden layer 1 (padded rows of w1 are zero, so padded y lanes contribute 0)
    h = jnp.dot(y, w1_ref[...], preferred_element_type=jnp.float32)
    h = jnp.maximum(h + b1_ref[...], 0.0)
    # hidden layer 2
    h = jnp.dot(h, w2_ref[...], preferred_element_type=jnp.float32)
    h = jnp.maximum(h + b2_ref[...], 0.0)
    # hidden layer 3
    h = jnp.dot(h, w3_ref[...], preferred_element_type=jnp.float32)
    h = jnp.maximum(h + b3_ref[...], 0.0)
    # output layer, columns already permuted into final x order (non-control slots)
    out = jnp.dot(h, w4_ref[...], preferred_element_type=jnp.float32) + b4_ref[...]
    # control values: y[:, :M] routed to control columns via a static 0/1 matrix
    out = out + jnp.dot(y, wpass_ref[...], preferred_element_type=jnp.float32)
    o_ref[...] = out.astype(o_ref.dtype)


def make_decoder_params(key, nx, M, hidden_dim, P):
    """torch.nn.Linear default init (U(-1/sqrt(in), 1/sqrt(in))); W stored (in, out)."""
    dims = [(P - M, hidden_dim), (hidden_dim, hidden_dim),
            (hidden_dim, hidden_dim), (hidden_dim, nx - M)]
    params = []
    for (din, dout) in dims:
        key, kw, kb = jax.random.split(key, 3)
        bound = 1.0 / np.sqrt(din)
        w = jax.random.uniform(kw, (din, dout), jnp.float32, -bound, bound)
        b = jax.random.uniform(kb, (1, dout), jnp.float32, -bound, bound)
        params.extend([w, b])
    return tuple(params)


def pack_decoder_params(params, nx, M, P, control_positions):
    """One-time static re-packing: pad all dims to lane width and fold the
    output-column permutation + control passthrough into the weights."""
    w1, b1, w2, b2, w3, b3, w4, b4 = [np.asarray(p, np.float32) for p in params]
    hidden = w1.shape[1]
    H = _round_up(hidden, _LANE)
    Pp = _round_up(P, _LANE)
    NX = _round_up(nx, _LANE)

    control_positions = np.asarray(control_positions, dtype=np.int64)
    mask = np.ones(nx, dtype=bool)
    mask[control_positions] = False
    non_control = np.nonzero(mask)[0]

    # layer 1 consumes the FULL padded y; only rows [M, P) carry weights.
    w1p = np.zeros((Pp, H), np.float32); w1p[M:P, :hidden] = w1
    b1p = np.zeros((1, H), np.float32);  b1p[0, :hidden] = b1
    w2p = np.zeros((H, H), np.float32);  w2p[:hidden, :hidden] = w2
    b2p = np.zeros((1, H), np.float32);  b2p[0, :hidden] = b2
    w3p = np.zeros((H, H), np.float32);  w3p[:hidden, :hidden] = w3
    b3p = np.zeros((1, H), np.float32);  b3p[0, :hidden] = b3
    # layer 4 writes straight into final x column order (non-control slots).
    w4p = np.zeros((H, NX), np.float32); w4p[:hidden, non_control] = w4
    b4p = np.zeros((1, NX), np.float32); b4p[0, non_control] = b4
    # passthrough: x[:, control_positions[i]] = y[:, i] for i < M.
    wpass = np.zeros((Pp, NX), np.float32)
    wpass[np.arange(M), control_positions] = 1.0

    packed = tuple(jnp.asarray(a) for a in
                   (w1p, b1p, w2p, b2p, w3p, b3p, w4p, b4p, wpass))
    return packed, (Pp, H, NX)


def decoder_forward(y, packed_params, dims, nx, batch_tile=512):
    """Full Decoder.forward. `packed_params`/`dims` come from pack_decoder_params."""
    Pp, H, NX = dims
    batch, P = y.shape

    # batch tile: multiple of 8, as large as reasonable (weights stay resident).
    TB = min(_round_up(batch, _SUBLANE), _round_up(batch_tile, _SUBLANE))
    Bp = _round_up(batch, TB)
    nb = Bp // TB

    y_pad = jnp.pad(y.astype(jnp.float32), ((0, Bp - batch), (0, Pp - P)))
    weights = packed_params

    flops = 2 * Bp * (Pp * H + 2 * H * H + H * NX + Pp * NX)
    bytes_accessed = 4 * (Bp * Pp + Bp * NX
                          + sum(int(np.prod(w.shape)) for w in weights))
    cost = pl.CostEstimate(flops=flops, transcendentals=0,
                           bytes_accessed=bytes_accessed)

    x_pad = pl.pallas_call(
        _decoder_kernel,
        out_shape=jax.ShapeDtypeStruct((Bp, NX), jnp.float32),
        grid=(nb,),
        in_specs=[pl.BlockSpec((TB, Pp), lambda i: (i, 0))]
                 + [pl.BlockSpec(w.shape, lambda i: (0, 0)) for w in weights],
        out_specs=pl.BlockSpec((TB, NX), lambda i: (i, 0)),
        compiler_params=pltpu.CompilerParams(
            dimension_semantics=("parallel",)),
        cost_estimate=cost,
    )(y_pad, *weights)

    # static slice: drop batch/lane padding (columns are already in final order)
    return x_pad[:batch, :nx]


def decoder_reference(y, params, nx, M, control_positions):
    """Pure-JAX reference mirroring the PyTorch module."""
    w1, b1, w2, b2, w3, b3, w4, b4 = params
    h = jnp.maximum(y[:, M:] @ w1 + b1, 0.0)
    h = jnp.maximum(h @ w2 + b2, 0.0)
    h = jnp.maximum(h @ w3 + b3, 0.0)
    x_non_control = h @ w4 + b4
    control_positions = jnp.asarray(control_positions, dtype=jnp.int32)
    mask = np.ones(nx, dtype=bool)
    mask[np.asarray(control_positions)] = False
    non_control_positions = jnp.asarray(np.nonzero(mask)[0], dtype=jnp.int32)
    x = jnp.zeros((y.shape[0], nx), dtype=jnp.float32)
    x = x.at[:, control_positions].set(y[:, :M])
    x = x.at[:, non_control_positions].set(x_non_control)
    return x


if __name__ == "__main__":
    # Small shapes consistent with the module: nx grid points, M control points,
    # P observations, hidden_dim MLP width.
    nx, M, hidden_dim, P = 16, 4, 32, 8
    control_positions = [0, 5, 10, 15]
    batch = 2

    key = jax.random.PRNGKey(0)
    key, ky = jax.random.split(key)
    params = make_decoder_params(key, nx, M, hidden_dim, P)
    y = jax.random.normal(ky, (batch, P), dtype=jnp.float32)

    packed, dims = pack_decoder_params(params, nx, M, P, control_positions)

    out = decoder_forward(y, packed, dims, nx)
    out = jax.block_until_ready(out)

    ref = decoder_reference(y, params, nx, M, control_positions)
    np.testing.assert_allclose(np.asarray(out), np.asarray(ref),
                               rtol=1e-5, atol=1e-5)
    print("KERNEL_OK")
</pallas_src>

<mosaic_0001>
module attributes {stable_mosaic.version = 11 : i64} {
  func.func @_decoder_kernel(%arg0: i32, %arg1: memref<8x128xf32, #tpu.memory_space<vmem>>, %arg2: memref<128x128xf32, #tpu.memory_space<vmem>>, %arg3: memref<1x128xf32, #tpu.memory_space<vmem>>, %arg4: memref<128x128xf32, #tpu.memory_space<vmem>>, %arg5: memref<1x128xf32, #tpu.memory_space<vmem>>, %arg6: memref<128x128xf32, #tpu.memory_space<vmem>>, %arg7: memref<1x128xf32, #tpu.memory_space<vmem>>, %arg8: memref<128x128xf32, #tpu.memory_space<vmem>>, %arg9: memref<1x128xf32, #tpu.memory_space<vmem>>, %arg10: memref<128x128xf32, #tpu.memory_space<vmem>>, %arg11: memref<8x128xf32, #tpu.memory_space<vmem>>) attributes {dimension_semantics = [#tpu.dimension_semantics<parallel>], iteration_bounds = array<i64: 1>, scalar_prefetch = 0 : i64, scratch_operands = 0 : i64, tpu.core_type = #tpu.core_type<tc>, window_params = [{transform_indices = @transform_0, window_bounds = array<i64: 8, 128>}, {pipeline_mode = #tpu.pipeline_mode<synchronous>, transform_indices = @transform_1, window_bounds = array<i64: 128, 128>}, {pipeline_mode = #tpu.pipeline_mode<synchronous>, transform_indices = @transform_2, window_bounds = array<i64: 1, 128>}, {pipeline_mode = #tpu.pipeline_mode<synchronous>, transform_indices = @transform_3, window_bounds = array<i64: 128, 128>}, {pipeline_mode = #tpu.pipeline_mode<synchronous>, transform_indices = @transform_4, window_bounds = array<i64: 1, 128>}, {pipeline_mode = #tpu.pipeline_mode<synchronous>, transform_indices = @transform_5, window_bounds = array<i64: 128, 128>}, {pipeline_mode = #tpu.pipeline_mode<synchronous>, transform_indices = @transform_6, window_bounds = array<i64: 1, 128>}, {pipeline_mode = #tpu.pipeline_mode<synchronous>, transform_indices = @transform_7, window_bounds = array<i64: 128, 128>}, {pipeline_mode = #tpu.pipeline_mode<synchronous>, transform_indices = @transform_8, window_bounds = array<i64: 1, 128>}, {pipeline_mode = #tpu.pipeline_mode<synchronous>, transform_indices = @transform_9, window_bounds = array<i64: 128, 128>}, {transform_indices = @transform_10, window_bounds = array<i64: 8, 128>}]} {
    %c0 = arith.constant 0 : index
    %c0_0 = arith.constant 0 : index
    %0 = vector.load %arg1[%c0, %c0_0] : memref<8x128xf32, #tpu.memory_space<vmem>>, vector<8x128xf32>
    %c0_1 = arith.constant 0 : index
    %c0_2 = arith.constant 0 : index
    %1 = vector.load %arg2[%c0_1, %c0_2] : memref<128x128xf32, #tpu.memory_space<vmem>>, vector<128x128xf32>
    %cst = arith.constant dense<0.000000e+00> : vector<8x128xf32>
    %2 = tpu.matmul %0, %1, %cst {dimension_numbers = #tpu.dot_dimension_numbers<[1], [0], [0], [1], [0, 0, 1, 1], [], []>} : vector<8x128xf32>, vector<128x128xf32>, vector<8x128xf32> -> vector<8x128xf32>
    %c0_3 = arith.constant 0 : index
    %c0_4 = arith.constant 0 : index
    %3 = vector.load %arg3[%c0_3, %c0_4] : memref<1x128xf32, #tpu.memory_space<vmem>>, vector<1x128xf32>
    %4 = vector.broadcast %3 : vector<1x128xf32> to vector<8x128xf32>
    %5 = arith.addf %2, %4 : vector<8x128xf32>
    %cst_5 = arith.constant 0.000000e+00 : f32
    %6 = vector.broadcast %cst_5 : f32 to vector<8x128xf32>
    %7 = arith.maximumf %5, %6 : vector<8x128xf32>
    %c0_6 = arith.constant 0 : index
    %c0_7 = arith.constant 0 : index
    %8 = vector.load %arg4[%c0_6, %c0_7] : memref<128x128xf32, #tpu.memory_space<vmem>>, vector<128x128xf32>
    %cst_8 = arith.constant dense<0.000000e+00> : vector<8x128xf32>
    %9 = tpu.matmul %7, %8, %cst_8 {dimension_numbers = #tpu.dot_dimension_numbers<[1], [0], [0], [1], [0, 0, 1, 1], [], []>} : vector<8x128xf32>, vector<128x128xf32>, vector<8x128xf32> -> vector<8x128xf32>
    %c0_9 = arith.constant 0 : index
    %c0_10 = arith.constant 0 : index
    %10 = vector.load %arg5[%c0_9, %c0_10] : memref<1x128xf32, #tpu.memory_space<vmem>>, vector<1x128xf32>
    %11 = vector.broadcast %10 : vector<1x128xf32> to vector<8x128xf32>
    %12 = arith.addf %9, %11 : vector<8x128xf32>
    %cst_11 = arith.constant 0.000000e+00 : f32
    %13 = vector.broadcast %cst_11 : f32 to vector<8x128xf32>
    %14 = arith.maximumf %12, %13 : vector<8x128xf32>
    %c0_12 = arith.constant 0 : index
    %c0_13 = arith.constant 0 : index
    %15 = vector.load %arg6[%c0_12, %c0_13] : memref<128x128xf32, #tpu.memory_space<vmem>>, vector<128x128xf32>
    %cst_14 = arith.constant dense<0.000000e+00> : vector<8x128xf32>
    %16 = tpu.matmul %14, %15, %cst_14 {dimension_numbers = #tpu.dot_dimension_numbers<[1], [0], [0], [1], [0, 0, 1, 1], [], []>} : vector<8x128xf32>, vector<128x128xf32>, vector<8x128xf32> -> vector<8x128xf32>
    %c0_15 = arith.constant 0 : index
    %c0_16 = arith.constant 0 : index
    %17 = vector.load %arg7[%c0_15, %c0_16] : memref<1x128xf32, #tpu.memory_space<vmem>>, vector<1x128xf32>
    %18 = vector.broadcast %17 : vector<1x128xf32> to vector<8x128xf32>
    %19 = arith.addf %16, %18 : vector<8x128xf32>
    %cst_17 = arith.constant 0.000000e+00 : f32
    %20 = vector.broadcast %cst_17 : f32 to vector<8x128xf32>
    %21 = arith.maximumf %19, %20 : vector<8x128xf32>
    %c0_18 = arith.constant 0 : index
    %c0_19 = arith.constant 0 : index
    %22 = vector.load %arg8[%c0_18, %c0_19] : memref<128x128xf32, #tpu.memory_space<vmem>>, vector<128x128xf32>
    %cst_20 = arith.constant dense<0.000000e+00> : vector<8x128xf32>
    %23 = tpu.matmul %21, %22, %cst_20 {dimension_numbers = #tpu.dot_dimension_numbers<[1], [0], [0], [1], [0, 0, 1, 1], [], []>} : vector<8x128xf32>, vector<128x128xf32>, vector<8x128xf32> -> vector<8x128xf32>
    %c0_21 = arith.constant 0 : index
    %c0_22 = arith.constant 0 : index
    %24 = vector.load %arg9[%c0_21, %c0_22] : memref<1x128xf32, #tpu.memory_space<vmem>>, vector<1x128xf32>
    %25 = vector.broadcast %24 : vector<1x128xf32> to vector<8x128xf32>
    %26 = arith.addf %23, %25 : vector<8x128xf32>
    %c0_23 = arith.constant 0 : index
    %c0_24 = arith.constant 0 : index
    %27 = vector.load %arg10[%c0_23, %c0_24] : memref<128x128xf32, #tpu.memory_space<vmem>>, vector<128x128xf32>
    %cst_25 = arith.constant dense<0.000000e+00> : vector<8x128xf32>
    %28 = tpu.matmul %0, %27, %cst_25 {dimension_numbers = #tpu.dot_dimension_numbers<[1], [0], [0], [1], [0, 0, 1, 1], [], []>} : vector<8x128xf32>, vector<128x128xf32>, vector<8x128xf32> -> vector<8x128xf32>
    %29 = arith.addf %26, %28 : vector<8x128xf32>
    %c0_26 = arith.constant 0 : index
    %c0_27 = arith.constant 0 : index
    %30 = vector.load %arg11[%c0_26, %c0_27] : memref<8x128xf32, #tpu.memory_space<vmem>>, vector<8x128xf32>
    tpu.vector_store %arg11[%c0_26, %c0_27], %29 {strides = array<i32>} : memref<8x128xf32, #tpu.memory_space<vmem>>, vector<8x128xf32>,
    return
  }
  func.func @transform_0(%arg0: i32) -> (i32, i32) {
    %c0_i32 = arith.constant 0 : i32
    %c0_i32_0 = arith.constant 0 : i32
    return %arg0, %c0_i32 : i32, i32
  }
  func.func @transform_1(%arg0: i32) -> (i32, i32) {
    %c0_i32 = arith.constant 0 : i32
    %c0_i32_0 = arith.constant 0 : i32
    %c0_i32_1 = arith.constant 0 : i32
    return %c0_i32, %c0_i32_0 : i32, i32
  }
  func.func @transform_2(%arg0: i32) -> (i32, i32) {
    %c0_i32 = arith.constant 0 : i32
    %c0_i32_0 = arith.constant 0 : i32
    %c0_i32_1 = arith.constant 0 : i32
    return %c0_i32, %c0_i32_0 : i32, i32
  }
  func.func @transform_3(%arg0: i32) -> (i32, i32) {
    %c0_i32 = arith.constant 0 : i32
    %c0_i32_0 = arith.constant 0 : i32
    %c0_i32_1 = arith.constant 0 : i32
    return %c0_i32, %c0_i32_0 : i32, i32
  }
  func.func @transform_4(%arg0: i32) -> (i32, i32) {
    %c0_i32 = arith.constant 0 : i32
    %c0_i32_0 = arith.constant 0 : i32
    %c0_i32_1 = arith.constant 0 : i32
    return %c0_i32, %c0_i32_0 : i32, i32
  }
  func.func @transform_5(%arg0: i32) -> (i32, i32) {
    %c0_i32 = arith.constant 0 : i32
    %c0_i32_0 = arith.constant 0 : i32
    %c0_i32_1 = arith.constant 0 : i32
    return %c0_i32, %c0_i32_0 : i32, i32
  }
  func.func @transform_6(%arg0: i32) -> (i32, i32) {
    %c0_i32 = arith.constant 0 : i32
    %c0_i32_0 = arith.constant 0 : i32
    %c0_i32_1 = arith.constant 0 : i32
    return %c0_i32, %c0_i32_0 : i32, i32
  }
  func.func @transform_7(%arg0: i32) -> (i32, i32) {
    %c0_i32 = arith.constant 0 : i32
    %c0_i32_0 = arith.constant 0 : i32
    %c0_i32_1 = arith.constant 0 : i32
    return %c0_i32, %c0_i32_0 : i32, i32
  }
  func.func @transform_8(%arg0: i32) -> (i32, i32) {
    %c0_i32 = arith.constant 0 : i32
    %c0_i32_0 = arith.constant 0 : i32
    %c0_i32_1 = arith.constant 0 : i32
    return %c0_i32, %c0_i32_0 : i32, i32
  }
  func.func @transform_9(%arg0: i32) -> (i32, i32) {
    %c0_i32 = arith.constant 0 : i32
    %c0_i32_0 = arith.constant 0 : i32
    %c0_i32_1 = arith.constant 0 : i32
    return %c0_i32, %c0_i32_0 : i32, i32
  }
  func.func @transform_10(%arg0: i32) -> (i32, i32) {
    %c0_i32 = arith.constant 0 : i32
    %c0_i32_0 = arith.constant 0 : i32
    return %arg0, %c0_i32 : i32, i32
  }
}

</mosaic_0001>

<bundles_post_ra>
// kernel: tpu_custom_call.1
= control target key start
LH: loop header
LB: loop body
LE: loop exit
PB: predicated region body
PF: predicated region fallthrough
CT: control target
= control target key end

     0   :  { %15 = vsyncpa [#allocation3], 0  ;;  %s657_s0 = inlined_call_operand.hbm [shape: f32[8,128], index: 0, kind: input, shape index: {}]   ;;  %s658_s1 = inlined_call_operand.hbm [shape: f32[128,128], index: 1, kind: input, shape index: {}]   ;;  %s659_s2 = inlined_call_operand.vmem [shape: f32[1,128], index: 2, kind: input, shape index: {}]   ;;  %s660_s3 = inlined_call_operand.hbm [shape: f32[128,128], index: 3, kind: input, shape index: {}]   ;;  %s661_s4 = inlined_call_operand.vmem [shape: f32[1,128], index: 4, kind: input, shape index: {}]   ;;  %s662_s5 = inlined_call_operand.hbm [shape: f32[128,128], index: 5, kind: input, shape index: {}]   ;;  %s663_s6 = inlined_call_operand.vmem [shape: f32[1,128], index: 6, kind: input, shape index: {}]   ;;  %s664_s7 = inlined_call_operand.hbm [shape: f32[128,128], index: 7, kind: input, shape index: {}]   ;;  %s665_s8 = inlined_call_operand.vmem [shape: f32[1,128], index: 8, kind: input, shape index: {}]   ;;  %s666_s9 = inlined_call_operand.hbm [shape: f32[128,128], index: 9, kind: input, shape index: {}]   ;;  %s667_s10 = inlined_call_operand.hbm [shape: f32[8,128], index: 10, kind: output, shape index: {}]  }
   0x1   :  { %16 = vsyncpa [#allocation6], 0 }
   0x2   :  { %17 = vsyncpa [#allocation9], 0 }
   0x3   :  { %18 = vsyncpa [#allocation12], 0  ;;  %s35_s15 = sshll.u32 %s658_s1, 4  ;;  %s36_s15 = int_to_ptr.hbm [resolvable:$true] %s35_s15 }
   0x4   :  { %19 = vsyncpa [#allocation4], 0  ;;  %s541_s16 = smov [#allocation5]   ;;  %s65_s20 = sshll.u32 %s662_s5, 4  ;;  %s66_s20 = int_to_ptr.hbm [resolvable:$true] %s65_s20 }
   0x5   :  { %s37_s17 = sshll.u32 %s541_s16, 4  ;;  %s542_s21 = smov 128   ;;  %s38_s17 = int_to_ptr.vmem [resolvable:$true] %s37_s17 }
   0x6   :  { %s543_s22 = smov 8   ;;  %s544_s23 = smov [#allocation8]  }
   0x7   :  { %43 = dma.hbm_to_vmem [thread:$0]  %s36_s15, 2048, %s38_s17, [#allocation6], %s542_s21, %s542_s21, %s543_s22  }
   0x8   :  { %s67_s24 = sshll.u32 %s544_s23, 4  ;;  %s25_s26 = sshll.u32 %s657_s0, 4  ;;  %s68_s24 = int_to_ptr.vmem [resolvable:$true] %s67_s24  ;;  %s26_s26 = int_to_ptr.hbm [resolvable:$true] %s25_s26 }
   0x9   :  { %73 = dma.hbm_to_vmem [thread:$0]  %s66_s20, 2048, %s68_s24, [#allocation9], %s542_s21, %s542_s21, %s543_s22  }
   0xa   :  { %s50_s28 = sshll.u32 %s660_s3, 4  ;;  %s545_s29 = smov [#allocation2]   ;;  %s51_s28 = int_to_ptr.hbm [resolvable:$true] %s50_s28 }
   0xb   :  { %s27_s30 = sshll.u32 %s545_s29, 4  ;;  %s546_s11 = smov [#allocation7]   ;;  %s28_s30 = int_to_ptr.vmem [resolvable:$true] %s27_s30 }
   0xc   :  { %30 = dma.hbm_to_vmem [thread:$0]  %s26_s26, 128, %s28_s30, [#allocation3]  }
   0xd   :  { %s52_s12 = sshll.u32 %s546_s11, 4  ;;  %s80_s0 = sshll.u32 %s664_s7, 4  ;;  %s53_s12 = int_to_ptr.vmem [resolvable:$true] %s52_s12  ;;  %s81_s0 = int_to_ptr.hbm [resolvable:$true] %s80_s0 }
   0xe   :  { %58 = dma.hbm_to_vmem [thread:$0]  %s51_s28, 2048, %s53_s12, [#allocation6], %s542_s21, %s542_s21, %s543_s22  }
   0xf   :  { %s95_s3 = sshll.u32 %s666_s9, 4  ;;  %s547_s17 = smov [#allocation10]   ;;  %s96_s3 = int_to_ptr.hbm [resolvable:$true] %s95_s3 }
  0x10   :  { %s82_s18 = sshll.u32 %s547_s17, 4  ;;  %s548_s19 = smov [#allocation11]   ;;  %s83_s18 = int_to_ptr.vmem [resolvable:$true] %s82_s18 }
  0x11   :  { %88 = dma.hbm_to_vmem [thread:$0]  %s81_s0, 2048, %s83_s18, [#allocation9], %s542_s21, %s542_s21, %s543_s22  }
  0x12   :  { %s97_s7 = sshll.u32 %s548_s19, 4  ;;  %s98_s7 = int_to_ptr.vmem [resolvable:$true] %s97_s7 }
  0x13   :  { %103 = dma.hbm_to_vmem [thread:$0]  %s96_s3, 2048, %s98_s7, [#allocation12], %s542_s21, %s542_s21, %s543_s22  }
  0x14   :  { %531 = dma.done.wait [#allocation3], 128  }
  0x15   :  { %532 = vsyncadd [#allocation3], 4294967168 }
  0x16   :  { %533 = dma.done.wait [#allocation6], 4096  }
  0x17   :  { %534 = vsyncadd [#allocation6], 4294963200 }
  0x18   :  { %535 = dma.done.wait [#allocation9], 4096  }
  0x19   :  { %536 = vsyncadd [#allocation9], 4294963200 }
  0x1a   :  { %537 = dma.done.wait [#allocation12], 2048  }
  0x1b   :  { %538 = vsyncadd [#allocation12], 4294965248  ;;  %v144_v0 = vld [vmem:[#allocation5 + $0x78] sm:$0xff]  ;;  %v143_v1 = vld [vmem:[#allocation5 + $0x70] sm:$0xff]  ;;  %s549_s25 = smov [#allocation13]   ;;  %s337_s27 = sshll.u32 %s667_s10, 4  ;;  %s338_s27 = int_to_ptr.hbm [resolvable:$true] %s337_s27 }
  0x1c   :  { %149 = vmatpush.msra.mxu0 %v144_v0  ;;  %v142_v2 = vld [vmem:[#allocation5 + $0x68] sm:$0xff]  ;;  %v141_v3 = vld [vmem:[#allocation5 + $0x60] sm:$0xff]  ;;  %v185_v4 = vld [vmem:[#allocation7 + $0x78] sm:$0xff]  ;;  %s335_s1 = sshll.u32 %s549_s25, 4  ;;  %s336_s1 = int_to_ptr.vmem [resolvable:$true] %s335_s1 }
  0x1d   :  { %v140_v5 = vld [vmem:[#allocation5 + $0x58] sm:$0xff]  ;;  %190 = vmatpush.msra.mxu1 %v185_v4  ;;  %v184_v6 = vld [vmem:[#allocation7 + $0x70] sm:$0xff]  ;;  %v183_v7 = vld [vmem:[#allocation7 + $0x68] sm:$0xff] }
  0x1e   :  { %150 = vmatpush.msra.mxu0 %v143_v1  ;;  %v139_v8 = vld [vmem:[#allocation5 + $0x50] sm:$0xff]  ;;  %v182_v9 = vld [vmem:[#allocation7 + $0x60] sm:$0xff]  ;;  %v138_v10 = vld [vmem:[#allocation5 + $0x48] sm:$0xff] }
  0x1f   :  { %191 = vmatpush.msra.mxu1 %v184_v6  ;;  %v181_v11 = vld [vmem:[#allocation7 + $0x58] sm:$0xff]  ;;  %v137_v12 = vld [vmem:[#allocation5 + $0x40] sm:$0xff]  ;;  %v180_v13 = vld [vmem:[#allocation7 + $0x50] sm:$0xff] }
  0x20   :  { %151 = vmatpush.msra.mxu0 %v142_v2  ;;  %v136_v14 = vld [vmem:[#allocation5 + $0x38] sm:$0xff]  ;;  %v179_v15 = vld [vmem:[#allocation7 + $0x48] sm:$0xff]  ;;  %v135_v16 = vld [vmem:[#allocation5 + $0x30] sm:$0xff] }
  0x21   :  { %192 = vmatpush.msra.mxu1 %v183_v7  ;;  %v178_v17 = vld [vmem:[#allocation7 + $0x40] sm:$0xff]  ;;  %v134_v18 = vld [vmem:[#allocation5 + $0x28] sm:$0xff]  ;;  %v177_v19 = vld [vmem:[#allocation7 + $0x38] sm:$0xff] }
  0x22   :  { %152 = vmatpush.msra.mxu0 %v141_v3  ;;  %v133_v20 = vld [vmem:[#allocation5 + $0x20] sm:$0xff]  ;;  %v176_v21 = vld [vmem:[#allocation7 + $0x30] sm:$0xff]  ;;  %v132_v22 = vld [vmem:[#allocation5 + $0x18] sm:$0xff] }
  0x23   :  { %193 = vmatpush.msra.mxu1 %v182_v9  ;;  %v175_v23 = vld [vmem:[#allocation7 + $0x28] sm:$0xff]  ;;  %v131_v24 = vld [vmem:[#allocation5 + $0x10] sm:$0xff]  ;;  %v174_v25 = vld [vmem:[#allocation7 + $0x20] sm:$0xff] }
  0x24   :  { %153 = vmatpush.msra.mxu0 %v140_v5  ;;  %v130_v26 = vld [vmem:[#allocation5 + $0x8] sm:$0xff]  ;;  %v173_v27 = vld [vmem:[#allocation7 + $0x18] sm:$0xff]  ;;  %v129_v28 = vld [vmem:[#allocation5] sm:$0xff] }
  0x25   :  { %194 = vmatpush.msra.mxu1 %v181_v11  ;;  %v638_v29 = vld [vmem:[#allocation2] sm:$0xff]  ;;  %v172_v30 = vld [vmem:[#allocation7 + $0x10] sm:$0xff]  ;;  %v171_v31 = vld [vmem:[#allocation7 + $0x8] sm:$0xff] }
  0x26   :  { %154 = vmatpush.msra.mxu0 %v139_v8  ;;  %v170_v32 = vld [vmem:[#allocation7] sm:$0xff]  ;;  %v226_v33 = vld [vmem:[#allocation8 + $0x78] sm:$0xff]  ;;  %v225_v34 = vld [vmem:[#allocation8 + $0x70] sm:$0xff] }
  0x27   :  { %195 = vmatpush.msra.mxu1 %v180_v13  ;;  %231 = vmatpush.msra.mxu2 %v226_v33  ;;  %v224_v35 = vld [vmem:[#allocation8 + $0x68] sm:$0xff]  ;;  %v223_v36 = vld [vmem:[#allocation8 + $0x60] sm:$0xff]  ;;  %v222_v37 = vld [vmem:[#allocation8 + $0x58] sm:$0xff] }
  0x28   :  { %155 = vmatpush.msra.mxu0 %v138_v10  ;;  %v221_v38 = vld [vmem:[#allocation8 + $0x50] sm:$0xff]  ;;  %v220_v39 = vld [vmem:[#allocation8 + $0x48] sm:$0xff]  ;;  %v219_v40 = vld [vmem:[#allocation8 + $0x40] sm:$0xff] }
  0x29   :  { %196 = vmatpush.msra.mxu1 %v179_v15  ;;  %232 = vmatpush.msra.mxu2 %v225_v34  ;;  %v218_v41 = vld [vmem:[#allocation8 + $0x38] sm:$0xff]  ;;  %v217_v42 = vld [vmem:[#allocation8 + $0x30] sm:$0xff]  ;;  %v216_v43 = vld [vmem:[#allocation8 + $0x28] sm:$0xff] }
  0x2a   :  { %156 = vmatpush.msra.mxu0 %v137_v12  ;;  %v215_v44 = vld [vmem:[#allocation8 + $0x20] sm:$0xff]  ;;  %v214_v45 = vld [vmem:[#allocation8 + $0x18] sm:$0xff]  ;;  %v213_v50 = vld [vmem:[#allocation8 + $0x10] sm:$0xff] }
  0x2b   :  { %197 = vmatpush.msra.mxu1 %v178_v17  ;;  %233 = vmatpush.msra.mxu2 %v224_v35  ;;  %v359_v46 = vld [vmem:[%s659_s2] ss:$0 sm:$0xff]  ;;  %v212_v51 = vld [vmem:[#allocation8 + $0x8] sm:$0xff]  ;;  %v211_v52 = vld [vmem:[#allocation8] sm:$0xff] }
  0x2c   :  { %157 = vmatpush.msra.mxu0 %v136_v14  ;;  %v267_v53 = vld [vmem:[#allocation10 + $0x78] sm:$0xff]  ;;  %v266_v54 = vld [vmem:[#allocation10 + $0x70] sm:$0xff]  ;;  %v265_v56 = vld [vmem:[#allocation10 + $0x68] sm:$0xff] }
  0x2d   :  { %198 = vmatpush.msra.mxu1 %v177_v19  ;;  %234 = vmatpush.msra.mxu2 %v223_v36  ;;  %v307_v55 = vld [vmem:[#allocation11 + $0x78] sm:$0xff]  ;;  %v306_v57 = vld [vmem:[#allocation11 + $0x70] sm:$0xff]  ;;  %v305_v58 = vld [vmem:[#allocation11 + $0x68] sm:$0xff] }
  0x2e   :  { %158 = vmatpush.msra.mxu0 %v135_v16  ;;  %272 = vmatpush.msra.mxu3 %v267_v53  ;;  %v264_v59 = vld [vmem:[#allocation10 + $0x60] sm:$0xff]  ;;  %v263_v61 = vld [vmem:[#allocation10 + $0x58] sm:$0xff]  ;;  %v262_v63 = vld [vmem:[#allocation10 + $0x50] sm:$0xff] }
  0x2f   :  { %199 = vmatpush.msra.mxu1 %v176_v21  ;;  %235 = vmatpush.msra.mxu2 %v222_v37  ;;  %v304_v60 = vld [vmem:[#allocation11 + $0x60] sm:$0xff]  ;;  %v303_v62 = vld [vmem:[#allocation11 + $0x58] sm:$0xff]  ;;  %v302_v0 = vld [vmem:[#allocation11 + $0x50] sm:$0xff] }
  0x30   :  { %159 = vmatpush.msra.mxu0 %v134_v18  ;;  %273 = vmatpush.msra.mxu3 %v266_v54  ;;  %v261_v1 = vld [vmem:[#allocation10 + $0x48] sm:$0xff]  ;;  %v260_v3 = vld [vmem:[#allocation10 + $0x40] sm:$0xff]  ;;  %v259_v5 = vld [vmem:[#allocation10 + $0x38] sm:$0xff] }
  0x31   :  { %200 = vmatpush.msra.mxu1 %v175_v23  ;;  %236 = vmatpush.msra.mxu2 %v221_v38  ;;  %v301_v2 = vld [vmem:[#allocation11 + $0x48] sm:$0xff]  ;;  %v300_v4 = vld [vmem:[#allocation11 + $0x40] sm:$0xff]  ;;  %v299_v6 = vld [vmem:[#allocation11 + $0x38] sm:$0xff] }
  0x32   :  { %160 = vmatpush.msra.mxu0 %v133_v20  ;;  %274 = vmatpush.msra.mxu3 %v265_v56  ;;  %v258_v7 = vld [vmem:[#allocation10 + $0x30] sm:$0xff]  ;;  %v257_v8 = vld [vmem:[#allocation10 + $0x28] sm:$0xff]  ;;  %v256_v9 = vld [vmem:[#allocation10 + $0x20] sm:$0xff] }
  0x33   :  { %201 = vmatpush.msra.mxu1 %v174_v25  ;;  %237 = vmatpush.msra.mxu2 %v220_v39  ;;  %v255_v10 = vld [vmem:[#allocation10 + $0x18] sm:$0xff]  ;;  %v254_v15 = vld [vmem:[#allocation10 + $0x10] sm:$0xff]  ;;  %v253_v17 = vld [vmem:[#allocation10 + $0x8] sm:$0xff] }
  0x34   :  { %161 = vmatpush.msra.mxu0 %v132_v22  ;;  %275 = vmatpush.msra.mxu3 %v264_v59  ;;  %v360_v11 = vld [vmem:[%s661_s4] ss:$0 sm:$0xff]  ;;  %v298_v16 = vld [vmem:[#allocation11 + $0x30] sm:$0xff]  ;;  %v297_v18 = vld [vmem:[#allocation11 + $0x28] sm:$0xff] }
  0x35   :  { %202 = vmatpush.msra.mxu1 %v173_v27  ;;  %238 = vmatpush.msra.mxu2 %v219_v40  ;;  %v252_v19 = vld [vmem:[#allocation10] sm:$0xff]  ;;  %v295_v21 = vld [vmem:[#allocation11 + $0x18] sm:$0xff]  ;;  %v294_v22 = vld [vmem:[#allocation11 + $0x10] sm:$0xff] }
  0x36   :  { %162 = vmatpush.msra.mxu0 %v131_v24  ;;  %276 = vmatpush.msra.mxu3 %v263_v61  ;;  %v296_v20 = vld [vmem:[#allocation11 + $0x20] sm:$0xff]  ;;  %v293_v23 = vld [vmem:[#allocation11 + $0x8] sm:$0xff]  ;;  %v361_v25 = vld [vmem:[%s663_s6] ss:$0 sm:$0xff] }
  0x37   :  { %203 = vmatpush.msra.mxu1 %v172_v30  ;;  %239 = vmatpush.msra.mxu2 %v218_v41  ;;  %v292_v24 = vld [vmem:[#allocation11] sm:$0xff]  ;;  %v362_v30 = vld [vmem:[%s665_s8] ss:$0 sm:$0xff] }
  0x38   :  { %163 = vmatpush.msra.mxu0 %v130_v26  ;;  %277 = vmatpush.msra.mxu3 %v262_v63 }
  0x39   :  { %204 = vmatpush.msra.mxu1 %v171_v31  ;;  %240 = vmatpush.msra.mxu2 %v217_v42 }
  0x3a   :  { %164 = vmatpush.msra.mxu0 %v129_v28  ;;  %278 = vmatpush.msra.mxu3 %v261_v1 }
  0x3b   :  { %165 = vmatmul.f32.vlgmr.msra.gmra.mxu0 %v638_v29  ;;  %205 = vmatpush.msra.mxu1 %v170_v32 }
  0x3c   :  { %241 = vmatpush.msra.mxu2 %v216_v43  ;;  %308 = vmatpush.msrb.mxu0 %v307_v55 }
  0x3d   :  { %279 = vmatpush.msra.mxu3 %v260_v3 }
  0x3e   :  { %242 = vmatpush.msra.mxu2 %v215_v44  ;;  %309 = vmatpush.msrb.mxu0 %v306_v57 }
  0x3f   :  { %280 = vmatpush.msra.mxu3 %v259_v5 }
  0x40   :  { %243 = vmatpush.msra.mxu2 %v214_v45  ;;  %310 = vmatpush.msrb.mxu0 %v305_v58 }
  0x41   :  { %281 = vmatpush.msra.mxu3 %v258_v7 }
  0x42   :  { %244 = vmatpush.msra.mxu2 %v213_v50  ;;  %311 = vmatpush.msrb.mxu0 %v304_v60 }
  0x43   :  { %282 = vmatpush.msra.mxu3 %v257_v8 }
  0x44   :  { %245 = vmatpush.msra.mxu2 %v212_v51  ;;  %312 = vmatpush.msrb.mxu0 %v303_v62 }
  0x45   :  { %283 = vmatpush.msra.mxu3 %v256_v9 }
  0x46   :  { %246 = vmatpush.msra.mxu2 %v211_v52  ;;  %313 = vmatpush.msrb.mxu0 %v302_v0 }
  0x47   :  { %284 = vmatpush.msra.mxu3 %v255_v10 }
  0x48   :  { %314 = vmatpush.msrb.mxu0 %v301_v2 }
  0x49   :  { %285 = vmatpush.msra.mxu3 %v254_v15 }
  0x4a   :  { %315 = vmatpush.msrb.mxu0 %v300_v4 }
  0x4b   :  { %286 = vmatpush.msra.mxu3 %v253_v17 }
  0x4c   :  { %316 = vmatpush.msrb.mxu0 %v299_v6 }
  0x4d   :  { %287 = vmatpush.msra.mxu3 %v252_v19 }
  0x4e   :  { %317 = vmatpush.msrb.mxu0 %v298_v16 }
  0x50   :  { %318 = vmatpush.msrb.mxu0 %v297_v18 }
  0x52   :  { %319 = vmatpush.msrb.mxu0 %v296_v20 }
  0x54   :  { %320 = vmatpush.msrb.mxu0 %v295_v21 }
  0x56   :  { %321 = vmatpush.msrb.mxu0 %v294_v22 }
  0x58   :  { %322 = vmatpush.msrb.mxu0 %v293_v23 }
  0x5a   :  { %323 = vmatpush.msrb.mxu0 %v292_v24 }
  0x5b   :  { %324 = vmatmul.f32.vlgmr.msrb.gmra.mxu0 %v638_v29 }
  0xb8   :  { %v166_v47 = vpop.f32.mrf.mxu0 }
  0xb9   :  { %v167_v48 = vadd.f32 %v359_v46, %v166_v47 }
  0xbb   :  { %v169_v49 = vmax.f32 %v167_v48, 0.0 }
  0xbd   :  { %206 = vmatmul.f32.vlgmr.msra.gmra.mxu1 %v169_v49 }
  0xd8   :  { %v325_v32 = vpop.f32.mrf.mxu0 }
 0x13a   :  { %v207_v12 = vpop.f32.mrf.mxu1 }
 0x13b   :  { %v208_v13 = vadd.f32 %v360_v11, %v207_v12 }
 0x13d   :  { %v210_v14 = vmax.f32 %v208_v13, 0.0 }
 0x13f   :  { %247 = vmatmul.f32.vlgmr.msra.gmra.mxu2 %v210_v14 }
 0x1c2   :  { %v248_v26 = vpop.f32.mrf.mxu2 }
 0x1c3   :  { %v249_v27 = vadd.f32 %v361_v25, %v248_v26 }
 0x1c5   :  { %v251_v28 = vmax.f32 %v249_v27, 0.0 }
 0x1c7   :  { %288 = vmatmul.f32.vlgmr.msra.gmra.mxu3 %v251_v28 }
 0x24a   :  { %v289_v31 = vpop.f32.mrf.mxu3 }
 0x24b   :  { %v290_v29 = vadd.f32 %v362_v30, %v289_v31 }
 0x24d   :  { %v328_v33 = vadd.f32 %v325_v32, %v290_v29 }
 0x24f   :  { %329 = vst [vmem:[#allocation13] sm:$0xff] %v328_v33 }
 0x250   :  { %340 = dma.vmem_to_hbm [thread:$0]  %s336_s1, 128, %s338_s27, [#allocation4]  }
 0x251   :  { %539 = dma.done.wait [#allocation4], 128  }
 0x252   :  { %540 = vsyncadd [#allocation4], 4294967168 }
 0x253   :  { %345 = vsyncpa [#allocation3], 1 }
 0x254   :  { %346 = vsyncpa [#allocation6], 1 }
 0x255   :  { %347 = vsyncpa [#allocation9], 1 }
 0x256   :  { %348 = vsyncpa [#allocation12], 1 }
 0x257   :  { %349 = vsyncpa [#allocation4], 1 }

</bundles_post_ra>
